<compile_context>
chip_gen: v7x
topology: tpu7x:2x2x1
jax: 0.10.0
libtpu: 0.0.40
codegen_flags: <defaults>
</compile_context>

<pallas_src>
import math
from functools import partial

import jax
import jax.numpy as jnp
from jax import lax
from jax.experimental import pallas as pl
from jax.experimental.pallas import tpu as pltpu

F32 = jnp.float32
BF16 = jnp.bfloat16
BBOX_XFORM_CLIP = math.log(1000.0 / 16.0)


def _round_up(x, m):
    return (x + m - 1) // m * m


# ----------------------------------------------------------------------------
# Pallas kernels
# ----------------------------------------------------------------------------
def _matmul_bias_kernel(x_ref, w_ref, b_ref, o_ref, *, relu):
    # Single K block, no accumulator scratch: o = x @ w + b (f32 accumulate),
    # optional ReLU, cast to the output dtype (bf16 for backbone activations).
    r = jnp.dot(x_ref[...], w_ref[...], preferred_element_type=jnp.float32)
    r = r + b_ref[...]
    if relu:
        r = jnp.maximum(r, 0.0)
    o_ref[...] = r.astype(o_ref.dtype)


def matmul_bias(x, wp, bp, *, relu=False, out_dtype=F32):
    """x:(M,K) bf16 @ wp:(K,N) bf16 + bp:(1,N) f32, fused bias (+ReLU).

    K is already padded to a bf16 sublane multiple (done once in im2col /
    weight pack), N is the real output-channel count (block dim == full dim),
    so no per-call operand padding copies are needed at this model's sizes.
    """
    m, k = x.shape
    kw_, n = wp.shape
    assert kw_ == k, (kw_, k)
    tm = 256 if m >= 1024 else 128          # >=2 steps/TC on v7x, 4-step pipeline on v5e/v6e
    mp = _round_up(m, tm)
    if mp != m:
        x = jnp.pad(x, ((0, mp - m), (0, 0)))
    out_itemsize = jnp.dtype(out_dtype).itemsize
    cost = pl.CostEstimate(
        flops=2 * mp * k * n,
        transcendentals=0,
        bytes_accessed=int(mp * k * 2 + k * n * 2 + n * 4 + mp * n * out_itemsize))
    out = pl.pallas_call(
        partial(_matmul_bias_kernel, relu=relu),
        out_shape=jax.ShapeDtypeStruct((mp, n), out_dtype),
        grid=(mp // tm,),
        in_specs=[
            pl.BlockSpec((tm, k), lambda i: (i, 0)),
            pl.BlockSpec((k, n), lambda i: (0, 0)),
            pl.BlockSpec((1, n), lambda i: (0, 0)),
        ],
        out_specs=pl.BlockSpec((tm, n), lambda i: (i, 0)),
        compiler_params=pltpu.CompilerParams(
            dimension_semantics=("parallel",)),
        cost_estimate=cost,
    )(x, wp, bp)
    return out if mp == m else out[:m]


def _postprocess_kernel(logit_ref, box_ref, prob_ref, boxes_ref, *, img_h, img_w):
    # Fused: class-wise softmax (class-major layout, classes on sublanes) +
    # BoxCoder(10,10,5,5).decode_single + clip_boxes_to_image.
    x = logit_ref[...]                                  # (Cp, Ap), pad rows = -1e30
    mx = jnp.max(x, axis=0, keepdims=True)
    e = jnp.exp(x - mx)
    prob_ref[...] = e / jnp.sum(e, axis=0, keepdims=True)

    bx = box_ref[...]                                   # (8, Ap): rows 0-3 rel, 4-7 anchors
    dx = bx[0:1] * 0.1
    dy = bx[1:2] * 0.1
    dw = jnp.minimum(bx[2:3] * 0.2, BBOX_XFORM_CLIP)
    dh = jnp.minimum(bx[3:4] * 0.2, BBOX_XFORM_CLIP)
    w = bx[6:7] - bx[4:5]
    h = bx[7:8] - bx[5:6]
    cx = bx[4:5] + 0.5 * w
    cy = bx[5:6] + 0.5 * h
    pcx = dx * w + cx
    pcy = dy * h + cy
    pw = jnp.exp(dw) * w
    ph = jnp.exp(dh) * h
    # Row stores (no XLU concatenate, no zero upper half of the output).
    boxes_ref[0:1, :] = jnp.clip(pcx - 0.5 * pw, 0.0, img_w)
    boxes_ref[1:2, :] = jnp.clip(pcy - 0.5 * ph, 0.0, img_h)
    boxes_ref[2:3, :] = jnp.clip(pcx + 0.5 * pw, 0.0, img_w)
    boxes_ref[3:4, :] = jnp.clip(pcy + 0.5 * ph, 0.0, img_h)


# ----------------------------------------------------------------------------
# Plain-JAX glue
# ----------------------------------------------------------------------------
def im2col(x_nhwc, kh, kw, stride, pad, k_pad):
    """Window extraction; emits bf16 patches already padded to k_pad columns.

    The K pad is a zero slice appended inside the SAME concatenate, so no
    extra HBM pass over the patch tensor is spent on padding.
    """
    # TODO(synk): replace with lax.conv_general_dilated or a halo-BlockSpec
    # Pallas conv at real SSD resolutions (the 9x patch inflation through HBM
    # is the dominant traffic term there).
    n, h, w, c = x_nhwc.shape
    xp = jnp.pad(x_nhwc, ((0, 0), (pad, pad), (pad, pad), (0, 0)))
    ho = (h + 2 * pad - kh) // stride + 1
    wo = (w + 2 * pad - kw) // stride + 1
    cols = []
    for i in range(kh):
        for j in range(kw):
            cols.append(xp[:, i:i + ho * stride:stride, j:j + wo * stride:stride, :])
    extra = k_pad - kh * kw * c
    if extra > 0:
        cols.append(jnp.zeros((n, ho, wo, extra), x_nhwc.dtype))
    patches = jnp.concatenate(cols, axis=-1)             # (N, Ho, Wo, k_pad)
    return patches.reshape(n * ho * wo, k_pad), n, ho, wo


def box_iou(a, b):
    area_a = jnp.clip(a[:, 2] - a[:, 0], 0) * jnp.clip(a[:, 3] - a[:, 1], 0)
    area_b = jnp.clip(b[:, 2] - b[:, 0], 0) * jnp.clip(b[:, 3] - b[:, 1], 0)
    lt = jnp.maximum(a[:, None, :2], b[None, :, :2])
    rb = jnp.minimum(a[:, None, 2:], b[None, :, 2:])
    wh = jnp.clip(rb - lt, 0)
    inter = wh[..., 0] * wh[..., 1]
    union = area_a[:, None] + area_b[None, :] - inter
    return inter / jnp.maximum(union, 1e-9)


def batched_nms_fixed(boxes, scores, labels, iou_thresh, max_out):
    """Fixed-size greedy batched NMS (class-offset trick), plain JAX."""
    # TODO(synk): torchvision batched_nms has a data-dependent output shape; a
    # fixed-size greedy NMS with a `valid` mask is used instead.
    max_coord = jnp.max(boxes) + 1.0
    b = boxes + labels.astype(F32)[:, None] * max_coord
    n = b.shape[0]
    order = jnp.argsort(-scores)
    b, s = b[order], scores[order]
    ious = box_iou(b, b)
    keep0 = s > 0.0

    def body(i, keep):
        suppress = (ious[i] > iou_thresh) & (jnp.arange(n) > i)
        return jnp.where(keep[i] & suppress, False, keep)

    keep = lax.fori_loop(0, n, body, keep0)
    kept_scores = jnp.where(keep, s, -1.0)
    top_s, top_i = lax.top_k(kept_scores, max_out)
    sel = order[top_i]
    valid = top_s > 0.0
    return (boxes[sel], jnp.where(valid, scores[sel], 0.0),
            jnp.where(valid, labels[sel], 0), valid)


# ----------------------------------------------------------------------------
# The model
# ----------------------------------------------------------------------------
class PallasSSD:
    NUM_LEVELS = 6
    ANCHORS_PER_LOC = 6          # aspect_ratios [2, 3] -> 2 + 2*2 anchors / location
    PALLAS_MIN_M = 128           # below this, jnp.dot (XLA fuses the tiny levels)

    def __init__(self, key, size, num_classes, image_mean=None, image_std=None,
                 score_thresh=0.01, nms_thresh=0.45,
                 detections_per_image=10, topk_candidates=16):
        self.size = size
        self.num_classes = num_classes
        self.image_mean = [0.485, 0.456, 0.406] if image_mean is None else image_mean
        self.image_std = [0.229, 0.224, 0.225] if image_std is None else image_std
        self.score_thresh = score_thresh
        self.nms_thresh = nms_thresh
        self.detections_per_image = detections_per_image
        self.topk_candidates = topk_candidates
        self.aspect_ratios = [[2, 3] for _ in range(self.NUM_LEVELS)]

        # Deterministic synthetic parameters (SSDLite-like structure, scaled down).
        self.backbone_channels = [16, 24, 32, 48, 64, 64]
        keys = jax.random.split(key, 3 * self.NUM_LEVELS)

        def conv_init(k, kh, kw, cin, cout):
            w = jax.random.normal(k, (kh, kw, cin, cout), F32) / math.sqrt(kh * kw * cin)
            return w, jnp.zeros((cout,), F32)

        def pack(w, b):
            """(kh,kw,cin,cout) -> (Kp, cout) bf16 + (1, cout) f32 bias, once at init.

            K is padded only to the bf16 sublane tile (mult of 16); N is the
            real cout (BlockSpec block dim == full array dim), so no padded
            activation needs materializing/slicing per layer.
            """
            kh, kw, cin, cout = w.shape
            kk = kh * kw * cin
            kp = _round_up(kk, 16)
            wp = jnp.zeros((kp, cout), BF16).at[:kk, :].set(
                w.reshape(kk, cout).astype(BF16))
            bp = b.reshape(1, cout).astype(F32)
            return wp, bp

        # TtSSDLiteFeatureExtractorMobileNet (synthetic): 6 stride-2 conv+ReLU stages.
        self.backbone_params = []
        cin = 3
        for i, cout in enumerate(self.backbone_channels):
            w, b = conv_init(keys[i], 3, 3, cin, cout)
            if i == 0:
                # Fold 1/std of the image normalization into conv1's weights.
                # The mean is subtracted in plain JAX *before* zero padding, so
                # padded zeros stay zero and no bias correction is needed.
                w = w / jnp.asarray(self.image_std, F32)[None, None, :, None]
            wp, bp = pack(w, b)
            self.backbone_params.append((wp, bp, cout))
            cin = cout

        # TtSSDLiteHead: per level the cls and reg convs are fused into one matmul
        # (weights concatenated along Cout: 6*num_classes cls cols then 6*4 reg cols).
        self.head_params = []
        for i, c in enumerate(self.backbone_channels):
            wc, bc = conv_init(keys[self.NUM_LEVELS + i], 3, 3, c,
                               self.ANCHORS_PER_LOC * num_classes)
            wr, br = conv_init(keys[2 * self.NUM_LEVELS + i], 3, 3, c,
                               self.ANCHORS_PER_LOC * 4)
            wp, bp = pack(jnp.concatenate([wc, wr], axis=-1),
                          jnp.concatenate([bc, br], axis=0))
            self.head_params.append((wp, bp))

    # ------------------------------------------------------------------ conv
    def _conv(self, patches, wp, bp, *, relu, out_dtype):
        m = patches.shape[0]
        if m >= self.PALLAS_MIN_M:
            return matmul_bias(patches, wp, bp, relu=relu, out_dtype=out_dtype)
        # Tiny late levels (M = 64, 16, 4, 1): kernel-launch + pipeline warmup
        # would dominate; let XLA fuse these into the surrounding glue.
        y = jnp.dot(patches, wp, preferred_element_type=F32) + bp
        if relu:
            y = jnp.maximum(y, 0.0)
        return y.astype(out_dtype)

    def backbone(self, x_nhwc_bf16):
        feats = []
        for wp, bp, cout in self.backbone_params:
            patches, n, ho, wo = im2col(x_nhwc_bf16, 3, 3, 2, 1, k_pad=wp.shape[0])
            y = self._conv(patches, wp, bp, relu=True, out_dtype=BF16)
            x_nhwc_bf16 = y.reshape(n, ho, wo, cout)     # no column slice: N == cout
            feats.append(x_nhwc_bf16)
        return feats

    def head(self, feats):
        nc = self.num_classes
        n_cls = self.ANCHORS_PER_LOC * nc
        cls_parts, reg_parts = [], []
        for feat, (wp, bp) in zip(feats, self.head_params):
            patches, _, ho, wo = im2col(feat, 3, 3, 1, 1, k_pad=wp.shape[0])
            y = self._conv(patches, wp, bp, relu=False, out_dtype=F32)
            m = y.shape[0]
            # Keep cls logits class-major (nc, M*A) so the softmax-kernel input
            # prep and the (M*A, nc) relayout collapse into one pass.
            c = y[:, :n_cls].reshape(m, self.ANCHORS_PER_LOC, nc)
            cls_parts.append(jnp.transpose(c, (2, 0, 1)).reshape(nc, m * self.ANCHORS_PER_LOC))
            reg_parts.append(y[:, n_cls:].reshape(m * self.ANCHORS_PER_LOC, 4))
        cls_t = jnp.concatenate(cls_parts, axis=1)        # (num_classes, A_total)
        reg = jnp.concatenate(reg_parts, axis=0)          # (A_total, 4)
        return cls_t, reg

    # TtDefaultBoxGenerator([[2,3]]*6, min_ratio=0.2, max_ratio=0.95)  (plain JAX glue).
    def anchors(self, feat_sizes, image_size, min_ratio=0.2, max_ratio=0.95):
        k = len(feat_sizes)
        scales = [min_ratio + (max_ratio - min_ratio) * i / (k - 1) for i in range(k)]
        scales.append(1.0)
        img_h, img_w = image_size
        out = []
        for idx, (fh, fw) in enumerate(feat_sizes):
            sk, sk1 = scales[idx], scales[idx + 1]
            wh = [(sk, sk), (math.sqrt(sk * sk1), math.sqrt(sk * sk1))]
            for ar in self.aspect_ratios[idx]:
                sq = math.sqrt(ar)
                wh += [(sk * sq, sk / sq), (sk / sq, sk * sq)]
            wh = jnp.clip(jnp.asarray(wh, F32), 0.0, 1.0)        # (A, 2), clip=True
            ys = (jnp.arange(fh, dtype=F32) + 0.5) / fh
            xs = (jnp.arange(fw, dtype=F32) + 0.5) / fw
            cx, cy = jnp.meshgrid(xs, ys)                        # (fh, fw)
            cx, cy = cx.reshape(-1, 1), cy.reshape(-1, 1)
            w, h = wh[:, 0][None, :], wh[:, 1][None, :]
            x1 = (cx - 0.5 * w) * img_w
            y1 = (cy - 0.5 * h) * img_h
            x2 = (cx + 0.5 * w) * img_w
            y2 = (cy + 0.5 * h) * img_h
            out.append(jnp.stack([x1, y1, x2, y2], axis=-1).reshape(-1, 4))
        return jnp.concatenate(out, axis=0)

    def postprocess_detections(self, cls_logits_t, bbox_regression, anchors, image_shape):
        nc = self.num_classes
        a = bbox_regression.shape[0]
        ap = _round_up(a, 128)
        crows = _round_up(max(nc, 8), 8)                 # 11 -> 16 sublanes (vs 128 before)
        logits_t = jnp.full((crows, ap), -1e30, F32).at[:nc, :a].set(cls_logits_t)
        box_in = (jnp.zeros((8, ap), F32)
                  .at[:4, :a].set(bbox_regression.T)
                  .at[4:, :a].set(anchors.T))
        img_h, img_w = image_shape
        probs_t, boxes_t = pl.pallas_call(
            partial(_postprocess_kernel, img_h=float(img_h), img_w=float(img_w)),
            out_shape=(jax.ShapeDtypeStruct((crows, ap), F32),
                       jax.ShapeDtypeStruct((4, ap), F32)),
        )(logits_t, box_in)

        boxes = boxes_t[:, :a].T                                  # (A, 4)
        cls_scores = probs_t[1:nc, :a]                            # skip background, (nc-1, A)
        num_topk = min(self.topk_candidates, a)
        sc = jnp.where(cls_scores > self.score_thresh, cls_scores, -1.0)
        top_s, top_i = lax.top_k(sc, num_topk)                    # per-class top-k, vectorized
        img_scores = top_s.reshape(-1)
        img_boxes = boxes[top_i.reshape(-1)]
        img_labels = jnp.repeat(jnp.arange(1, nc, dtype=jnp.int32), num_topk)
        kb, ks, kl, valid = batched_nms_fixed(img_boxes, img_scores, img_labels,
                                              self.nms_thresh, self.detections_per_image)
        return {"boxes": kb, "scores": ks, "labels": kl, "valid": valid}

    def __call__(self, image_nchw):
        # GeneralizedRCNNTransform: mean subtraction is a tiny plain-JAX op that
        # fuses with the first im2col pad; the 1/std scale is folded into conv1.
        # The demo image already matches fixed_size, so no resize is needed.
        mean = jnp.asarray(self.image_mean, F32)[None, :, None, None]
        x = (image_nchw.astype(F32) - mean).transpose(0, 2, 3, 1).astype(BF16)  # NCHW->NHWC bf16
        feats = self.backbone(x)
        cls_logits_t, bbox_reg = self.head(feats)
        feat_sizes = [(f.shape[1], f.shape[2]) for f in feats]
        anchors = self.anchors(feat_sizes, self.size)
        dets = self.postprocess_detections(cls_logits_t, bbox_reg, anchors, self.size)
        # transform.postprocess rescales boxes back to the original image size; here
        # fixed_size == original size so the scale ratio is 1 (identity).
        return dets


if __name__ == "__main__":
    key = jax.random.PRNGKey(0)
    k_img, k_par = jax.random.split(key)
    image = jax.random.uniform(k_img, (1, 3, 64, 64), F32)   # NCHW, like the torch module
    model = PallasSSD(k_par, size=(64, 64), num_classes=11)
    detections = model(image)
    jax.block_until_ready(detections)
    assert detections["boxes"].shape == (model.detections_per_image, 4)
    assert detections["scores"].shape == (model.detections_per_image,)
    print("KERNEL_OK")
</pallas_src>

<mosaic_0001>
module attributes {stable_mosaic.version = 11 : i64} {
  func.func @_matmul_bias_kernel(%arg0: i32, %arg1: memref<256x32xbf16, #tpu.memory_space<vmem>>, %arg2: memref<32x16xbf16, #tpu.memory_space<vmem>>, %arg3: memref<1x16xf32, #tpu.memory_space<vmem>>, %arg4: memref<256x16xbf16, #tpu.memory_space<vmem>>) attributes {dimension_semantics = [#tpu.dimension_semantics<parallel>], iteration_bounds = array<i64: 4>, scalar_prefetch = 0 : i64, scratch_operands = 0 : i64, tpu.core_type = #tpu.core_type<tc>, window_params = [{transform_indices = @transform_0, window_bounds = array<i64: 256, 32>}, {pipeline_mode = #tpu.pipeline_mode<synchronous>, transform_indices = @transform_1, window_bounds = array<i64: 32, 16>}, {pipeline_mode = #tpu.pipeline_mode<synchronous>, transform_indices = @transform_2, window_bounds = array<i64: 1, 16>}, {transform_indices = @transform_3, window_bounds = array<i64: 256, 16>}]} {
    %c0 = arith.constant 0 : index
    %c0_0 = arith.constant 0 : index
    %0 = vector.load %arg1[%c0, %c0_0] : memref<256x32xbf16, #tpu.memory_space<vmem>>, vector<256x32xbf16>
    %c0_1 = arith.constant 0 : index
    %c0_2 = arith.constant 0 : index
    %1 = vector.load %arg2[%c0_1, %c0_2] : memref<32x16xbf16, #tpu.memory_space<vmem>>, vector<32x16xbf16>
    %cst = arith.constant dense<0.000000e+00> : vector<256x16xf32>
    %2 = tpu.matmul %0, %1, %cst {dimension_numbers = #tpu.dot_dimension_numbers<[1], [0], [0], [1], [0, 0, 1, 1], [], []>} : vector<256x32xbf16>, vector<32x16xbf16>, vector<256x16xf32> -> vector<256x16xf32>
    %c0_3 = arith.constant 0 : index
    %c0_4 = arith.constant 0 : index
    %3 = vector.load %arg3[%c0_3, %c0_4] : memref<1x16xf32, #tpu.memory_space<vmem>>, vector<1x16xf32>
    %4 = vector.broadcast %3 : vector<1x16xf32> to vector<256x16xf32>
    %5 = arith.addf %2, %4 : vector<256x16xf32>
    %cst_5 = arith.constant 0.000000e+00 : f32
    %6 = vector.broadcast %cst_5 : f32 to vector<256x16xf32>
    %7 = arith.maximumf %5, %6 : vector<256x16xf32>
    %8 = arith.truncf %7 : vector<256x16xf32> to vector<256x16xbf16>
    %c0_6 = arith.constant 0 : index
    %c0_7 = arith.constant 0 : index
    %9 = vector.load %arg4[%c0_6, %c0_7] : memref<256x16xbf16, #tpu.memory_space<vmem>>, vector<256x16xbf16>
    tpu.vector_store %arg4[%c0_6, %c0_7], %8 {strides = array<i32>} : memref<256x16xbf16, #tpu.memory_space<vmem>>, vector<256x16xbf16>,
    return
  }
  func.func @transform_0(%arg0: i32) -> (i32, i32) {
    %c0_i32 = arith.constant 0 : i32
    %c0_i32_0 = arith.constant 0 : i32
    return %arg0, %c0_i32 : i32, i32
  }
  func.func @transform_1(%arg0: i32) -> (i32, i32) {
    %c0_i32 = arith.constant 0 : i32
    %c0_i32_0 = arith.constant 0 : i32
    %c0_i32_1 = arith.constant 0 : i32
    return %c0_i32, %c0_i32_0 : i32, i32
  }
  func.func @transform_2(%arg0: i32) -> (i32, i32) {
    %c0_i32 = arith.constant 0 : i32
    %c0_i32_0 = arith.constant 0 : i32
    %c0_i32_1 = arith.constant 0 : i32
    return %c0_i32, %c0_i32_0 : i32, i32
  }
  func.func @transform_3(%arg0: i32) -> (i32, i32) {
    %c0_i32 = arith.constant 0 : i32
    %c0_i32_0 = arith.constant 0 : i32
    return %arg0, %c0_i32 : i32, i32
  }
}

</mosaic_0001>

<bundles_post_ra>
// kernel: tpu_custom_call.1
= control target key start
LH: loop header
LB: loop body
LE: loop exit
PB: predicated region body
PF: predicated region fallthrough
CT: control target
= control target key end

     0   :  { %s991_s12 = smov 0   ;;  %s1158_s0 = inlined_call_operand.vmem [shape: bf16[1024,32], index: 0, kind: input, shape index: {}]   ;;  %s1159_s1 = inlined_call_operand.vmem [shape: bf16[32,16], index: 1, kind: input, shape index: {}]   ;;  %s1160_s2 = inlined_call_operand.vmem [shape: f32[1,16], index: 2, kind: input, shape index: {}]   ;;  %s1161_s3 = inlined_call_operand.vmem [shape: bf16[1024,16], index: 3, kind: output, shape index: {}]  }
   0x1 LB: > { %s769_s13 = sadd.s32 4294967295, %s969_s12   ;;  %p773_p0 = scmp.ge.s32.totalorder %s969_s12, 1  ;;  %s969_s12 = sphi %s991_s12, %s13_s12  }
   0x2   : > { %p138_p1 = scmp.lt.s32.totalorder %s969_s12, 5 }
   0x4   : > { %p139_p2 = pnand %p773_p0, %p138_p1 }
   0x5   : > { %v945_v0 = vld [vmem:[%s1159_s1] sm:$0xff] (!%p139_p2)   ;;  %s774_s16 = sshll.u32 (!%p139_p2), %s769_s13, 5  ;;  %v946_v1 = vld [vmem:[%s1159_s1 + $0x8] sm:$0xff] (!%p139_p2)   ;;  %vm310_vm0 = vcmask (!%p139_p2), 261120   ;;  %vm680_vm1 = vcmask (!%p139_p2), 125952  }
   0x6   : > { %142 = sbr.rel (%p139_p2) target bundleno = 265 (0x109), region = 32  ;;  %p163_p3 = scmp.lt.s32.totalorder (!%p139_p2), %s774_s16, 127  ;;  %897 = vmatprep.subr.bf16.mxu0 (!%p139_p2), %v945_v0  ;;  %933 = vmatprep.subr.bf16.mxu1 (!%p139_p2), %v945_v0  ;;  %v1050_v18 = vld [vmem:[%s1160_s2] ss:$0 sm:$0xff] (!%p139_p2) }
   0x7   : > { %898 = vmatpush3.bf16.msra.mxu0 (!%p139_p2), %v945_v0  ;;  %935 = vmatpush3.bf16.msra.mxu1 (!%p139_p2), %v945_v0 }
   0x8   : > { %899 = vmatprep.subr.bf16.mxu0 (!%p139_p2), %v946_v1  ;;  %934 = vmatprep.subr.bf16.mxu1 (!%p139_p2), %v946_v1 }
   0xb   : > { %900 = vmatpush3.bf16.msra.mxu0 (!%p139_p2), %v946_v1  ;;  %936 = vmatpush3.bf16.msra.mxu1 (!%p139_p2), %v946_v1 }
   0xd   : > { %s1163_s16 = smov (!%p163_p3, %s774_s16), 127 }
   0xe   : > { %s775_s19 = sshll.u32 %s1163_s16, 2 }
   0xf   : > { %s1013_s22 = scalar_lea.vmem %s1158_s0, %s775_s19  ;;  %s1062_s27 = scalar_lea.vmem %s1161_s3, %s775_s19 }
  0x10   : > { %v947_v2 = vld [vmem:[%s1013_s22] sm:$0xff]   ;;  %v949_v4 = vld [vmem:[%s1013_s22 + $0x8] sm:$0xff]   ;;  %v951_v6 = vld [vmem:[%s1013_s22 + $0x10] sm:$0xff]  }
  0x11   : > { %v948_v3 = vld [vmem:[%s1013_s22 + $0x40] sm:$0xff]   ;;  %901 = vmatprep.mubr.msk.bf16.mxu0 %vm310_vm0, %v947_v2  ;;  %v950_v5 = vld [vmem:[%s1013_s22 + $0x48] sm:$0xff]   ;;  %v952_v7 = vld [vmem:[%s1013_s22 + $0x50] sm:$0xff]  }
  0x12   : > { %917 = vmatprep.mubr.msk.bf16.mxu1 %vm310_vm0, %v948_v3  ;;  %902 = vmatmul.mubr.msk.bf16.vlgmr.msra.gmra.mrb[0].mxu0 %vm310_vm0, %v949_v4  ;;  %v953_v8 = vld [vmem:[%s1013_s22 + $0x18] sm:$0xff]   ;;  %v955_v10 = vld [vmem:[%s1013_s22 + $0x20] sm:$0xff]   ;;  %v957_v12 = vld [vmem:[%s1013_s22 + $0x28] sm:$0xff]  }
  0x13   : > { %918 = vmatmul.mubr.msk.bf16.vlgmr.msra.gmra.mrb[0].mxu1 %vm310_vm0, %v950_v5  ;;  %905 = vmatprep.mubr.msk.bf16.mxu0 %vm310_vm0, %v951_v6  ;;  %v954_v9 = vld [vmem:[%s1013_s22 + $0x58] sm:$0xff]   ;;  %v956_v11 = vld [vmem:[%s1013_s22 + $0x60] sm:$0xff]   ;;  %v958_v13 = vld [vmem:[%s1013_s22 + $0x68] sm:$0xff]  }
  0x14   : > { %921 = vmatprep.mubr.msk.bf16.mxu1 %vm310_vm0, %v952_v7  ;;  %v959_v14 = vld [vmem:[%s1013_s22 + $0x30] sm:$0xff]   ;;  %v961_v16 = vld [vmem:[%s1013_s22 + $0x38] sm:$0xff]  }
  0x15   : > { %v960_v15 = vld [vmem:[%s1013_s22 + $0x70] sm:$0xff]   ;;  %v962_v17 = vld [vmem:[%s1013_s22 + $0x78] sm:$0xff]  }
  0x1a   : > { %906 = vmatmul.mubr.msk.bf16.gmra.mrb[4].mxu0 %vm310_vm0, %v953_v8 }
  0x1b   : > { %922 = vmatmul.mubr.msk.bf16.gmra.mrb[4].mxu1 %vm310_vm0, %v954_v9  ;;  %909 = vmatprep.mubr.msk.bf16.mxu0 %vm310_vm0, %v955_v10 }
  0x1c   : > { %925 = vmatprep.mubr.msk.bf16.mxu1 %vm310_vm0, %v956_v11 }
  0x22   : > { %910 = vmatmul.mubr.msk.bf16.gmra.mrb[8].mxu0 %vm310_vm0, %v957_v12 }
  0x23   : > { %926 = vmatmul.mubr.msk.bf16.gmra.mrb[8].mxu1 %vm310_vm0, %v958_v13  ;;  %913 = vmatprep.mubr.msk.bf16.mxu0 %vm310_vm0, %v959_v14 }
  0x24   : > { %929 = vmatprep.mubr.msk.bf16.mxu1 %vm310_vm0, %v960_v15 }
  0x2a   : > { %914 = vmatmul.mubr.msk.bf16.gmra.mrb[12].mxu0 %vm310_vm0, %v961_v16 }
  0x2b   : > { %930 = vmatmul.mubr.msk.bf16.gmra.mrb[12].mxu1 %vm310_vm0, %v962_v17 }
  0xe5   : > { %v903_v19 = vpop.f32.mrb[0].mxu0 }
  0xe6   : > { %v402_v20 = vadd.f32 %v903_v19, %v1050_v18  ;;  %v919_v21 = vpop.f32.mrb[0].mxu1  ;;  %v393_v22 = vpop.f32.mrb[1].mxu0 }
  0xe7   : > { %v466_v23 = vadd.f32 %v919_v21, %v1050_v18  ;;  %v394_v24 = vadd.f32 %v1050_v18, %v393_v22  ;;  %v457_v25 = vpop.f32.mrb[1].mxu1  ;;  %v904_v26 = vpop.f32.mrb[2].mxu0 }
  0xe8   : > { %v522_v27 = vmax.f32 %v402_v20, 0.0  ;;  %v458_v28 = vadd.f32 %v1050_v18, %v457_v25  ;;  %v405_v29 = vadd.f32 %v904_v26, %v1050_v18  ;;  %v920_v30 = vpop.f32.mrb[2].mxu1  ;;  %v396_v31 = vpop.f32.mrb[3].mxu0 }
  0xe9   : > { %v538_v32 = vmax.f32 %v466_v23, 0.0  ;;  %v520_v33 = vmax.f32 %v394_v24, 0.0  ;;  %v469_v34 = vadd.f32 %v920_v30, %v1050_v18  ;;  %v397_v35 = vadd.f32 %v1050_v18, %v396_v31  ;;  %v460_v36 = vpop.f32.mrb[3].mxu1 }
  0xea   : > { %v849_v37 = vpack.c.bf16 %v522_v27, %v522_v27  ;;  %v536_v38 = vmax.f32 %v458_v28, 0.0  ;;  %v523_v39 = vmax.f32 %v405_v29, 0.0  ;;  %v461_v40 = vadd.f32 %v1050_v18, %v460_v36 }
  0xeb   : > { %v865_v41 = vpack.c.bf16 %v538_v32, %v538_v32  ;;  %v847_v42 = vpack.c.bf16 %v520_v33, %v520_v33  ;;  %v539_v43 = vmax.f32 %v469_v34, 0.0  ;;  %v521_v44 = vmax.f32 %v397_v35, 0.0 }
  0xec   : > { %683 = vst.msk [vmem:[%s1062_s27 + $0x8] sm:$0xf] %vm680_vm1, %v849_v37  ;;  %v863_v45 = vpack.c.bf16 %v536_v38, %v536_v38  ;;  %v850_v46 = vpack.c.bf16 %v523_v39, %v523_v39  ;;  %v537_v47 = vmax.f32 %v461_v40, 0.0 }
  0xed   : > { %699 = vst.msk [vmem:[%s1062_s27 + $0x48] sm:$0xf] %vm680_vm1, %v865_v41  ;;  %681 = vst.msk [vmem:[%s1062_s27] sm:$0xf] %vm680_vm1, %v847_v42  ;;  %v866_v48 = vpack.c.bf16 %v539_v43, %v539_v43  ;;  %v848_v49 = vpack.c.bf16 %v521_v44, %v521_v44  ;;  %v907_v50 = vpop.f32.mrb[4].mxu0 }
  0xee   : > { %697 = vst.msk [vmem:[%s1062_s27 + $0x40] sm:$0xf] %vm680_vm1, %v863_v45  ;;  %684 = vst.msk [vmem:[%s1062_s27 + $0xc] sm:$0xf] %vm680_vm1, %v850_v46  ;;  %v864_v51 = vpack.c.bf16 %v537_v47, %v537_v47  ;;  %v418_v52 = vadd.f32 %v907_v50, %v1050_v18  ;;  %v923_v53 = vpop.f32.mrb[4].mxu1  ;;  %v409_v54 = vpop.f32.mrb[5].mxu0 }
  0xef   : > { %700 = vst.msk [vmem:[%s1062_s27 + $0x4c] sm:$0xf] %vm680_vm1, %v866_v48  ;;  %682 = vst.msk [vmem:[%s1062_s27 + $0x4] sm:$0xf] %vm680_vm1, %v848_v49  ;;  %v482_v55 = vadd.f32 %v923_v53, %v1050_v18  ;;  %v410_v56 = vadd.f32 %v1050_v18, %v409_v54  ;;  %v473_v57 = vpop.f32.mrb[5].mxu1  ;;  %v908_v58 = vpop.f32.mrb[6].mxu0 }
  0xf0   : > { %698 = vst.msk [vmem:[%s1062_s27 + $0x44] sm:$0xf] %vm680_vm1, %v864_v51  ;;  %v526_v59 = vmax.f32 %v418_v52, 0.0  ;;  %v474_v60 = vadd.f32 %v1050_v18, %v473_v57  ;;  %v421_v61 = vadd.f32 %v908_v58, %v1050_v18  ;;  %v924_v62 = vpop.f32.mrb[6].mxu1  ;;  %v412_v63 = vpop.f32.mrb[7].mxu0 }
  0xf1   : > { %v542_v0 = vmax.f32 %v482_v55, 0.0  ;;  %v524_v1 = vmax.f32 %v410_v56, 0.0  ;;  %v485_v2 = vadd.f32 %v924_v62, %v1050_v18  ;;  %v413_v3 = vadd.f32 %v1050_v18, %v412_v63  ;;  %v476_v4 = vpop.f32.mrb[7].mxu1 }
  0xf2   : > { %v853_v5 = vpack.c.bf16 %v526_v59, %v526_v59  ;;  %v540_v6 = vmax.f32 %v474_v60, 0.0  ;;  %v527_v7 = vmax.f32 %v421_v61, 0.0  ;;  %v477_v8 = vadd.f32 %v1050_v18, %v476_v4 }
  0xf3   : > { %v869_v9 = vpack.c.bf16 %v542_v0, %v542_v0  ;;  %v851_v10 = vpack.c.bf16 %v524_v1, %v524_v1  ;;  %v543_v11 = vmax.f32 %v485_v2, 0.0  ;;  %v525_v12 = vmax.f32 %v413_v3, 0.0 }
  0xf4   : > { %687 = vst.msk [vmem:[%s1062_s27 + $0x18] sm:$0xf] %vm680_vm1, %v853_v5  ;;  %v867_v13 = vpack.c.bf16 %v540_v6, %v540_v6  ;;  %v854_v14 = vpack.c.bf16 %v527_v7, %v527_v7  ;;  %v541_v15 = vmax.f32 %v477_v8, 0.0 }
  0xf5   : > { %703 = vst.msk [vmem:[%s1062_s27 + $0x58] sm:$0xf] %vm680_vm1, %v869_v9  ;;  %685 = vst.msk [vmem:[%s1062_s27 + $0x10] sm:$0xf] %vm680_vm1, %v851_v10  ;;  %v870_v16 = vpack.c.bf16 %v543_v11, %v543_v11  ;;  %v852_v17 = vpack.c.bf16 %v525_v12, %v525_v12  ;;  %v911_v19 = vpop.f32.mrb[8].mxu0 }
  0xf6   : > { %701 = vst.msk [vmem:[%s1062_s27 + $0x50] sm:$0xf] %vm680_vm1, %v867_v13  ;;  %688 = vst.msk [vmem:[%s1062_s27 + $0x1c] sm:$0xf] %vm680_vm1, %v854_v14  ;;  %v868_v20 = vpack.c.bf16 %v541_v15, %v541_v15  ;;  %v434_v21 = vadd.f32 %v911_v19, %v1050_v18  ;;  %v927_v22 = vpop.f32.mrb[8].mxu1  ;;  %v425_v23 = vpop.f32.mrb[9].mxu0 }
  0xf7   : > { %704 = vst.msk [vmem:[%s1062_s27 + $0x5c] sm:$0xf] %vm680_vm1, %v870_v16  ;;  %686 = vst.msk [vmem:[%s1062_s27 + $0x14] sm:$0xf] %vm680_vm1, %v852_v17  ;;  %v498_v24 = vadd.f32 %v927_v22, %v1050_v18  ;;  %v426_v25 = vadd.f32 %v1050_v18, %v425_v23  ;;  %v489_v26 = vpop.f32.mrb[9].mxu1  ;;  %v912_v27 = vpop.f32.mrb[10].mxu0 }
  0xf8   : > { %702 = vst.msk [vmem:[%s1062_s27 + $0x54] sm:$0xf] %vm680_vm1, %v868_v20  ;;  %v530_v28 = vmax.f32 %v434_v21, 0.0  ;;  %v490_v29 = vadd.f32 %v1050_v18, %v489_v26  ;;  %v437_v30 = vadd.f32 %v912_v27, %v1050_v18  ;;  %v928_v31 = vpop.f32.mrb[10].mxu1  ;;  %v428_v32 = vpop.f32.mrb[11].mxu0 }
  0xf9   : > { %v546_v33 = vmax.f32 %v498_v24, 0.0  ;;  %v528_v34 = vmax.f32 %v426_v25, 0.0  ;;  %v501_v35 = vadd.f32 %v928_v31, %v1050_v18  ;;  %v429_v36 = vadd.f32 %v1050_v18, %v428_v32  ;;  %v492_v37 = vpop.f32.mrb[11].mxu1 }
  0xfa   : > { %v857_v38 = vpack.c.bf16 %v530_v28, %v530_v28  ;;  %v544_v39 = vmax.f32 %v490_v29, 0.0  ;;  %v531_v40 = vmax.f32 %v437_v30, 0.0  ;;  %v493_v41 = vadd.f32 %v1050_v18, %v492_v37 }
  0xfb   : > { %v873_v42 = vpack.c.bf16 %v546_v33, %v546_v33  ;;  %v855_v43 = vpack.c.bf16 %v528_v34, %v528_v34  ;;  %v547_v44 = vmax.f32 %v501_v35, 0.0  ;;  %v529_v45 = vmax.f32 %v429_v36, 0.0 }
  0xfc   : > { %691 = vst.msk [vmem:[%s1062_s27 + $0x28] sm:$0xf] %vm680_vm1, %v857_v38  ;;  %v871_v46 = vpack.c.bf16 %v544_v39, %v544_v39  ;;  %v858_v47 = vpack.c.bf16 %v531_v40, %v531_v40  ;;  %v545_v48 = vmax.f32 %v493_v41, 0.0 }
  0xfd   : > { %707 = vst.msk [vmem:[%s1062_s27 + $0x68] sm:$0xf] %vm680_vm1, %v873_v42  ;;  %689 = vst.msk [vmem:[%s1062_s27 + $0x20] sm:$0xf] %vm680_vm1, %v855_v43  ;;  %v874_v49 = vpack.c.bf16 %v547_v44, %v547_v44  ;;  %v856_v50 = vpack.c.bf16 %v529_v45, %v529_v45  ;;  %v915_v51 = vpop.f32.mrb[12].mxu0 }
  0xfe   : > { %705 = vst.msk [vmem:[%s1062_s27 + $0x60] sm:$0xf] %vm680_vm1, %v871_v46  ;;  %692 = vst.msk [vmem:[%s1062_s27 + $0x2c] sm:$0xf] %vm680_vm1, %v858_v47  ;;  %v872_v52 = vpack.c.bf16 %v545_v48, %v545_v48  ;;  %v450_v53 = vadd.f32 %v915_v51, %v1050_v18  ;;  %v931_v54 = vpop.f32.mrb[12].mxu1  ;;  %v441_v55 = vpop.f32.mrb[13].mxu0 }
  0xff   : > { %708 = vst.msk [vmem:[%s1062_s27 + $0x6c] sm:$0xf] %vm680_vm1, %v874_v49  ;;  %690 = vst.msk [vmem:[%s1062_s27 + $0x24] sm:$0xf] %vm680_vm1, %v856_v50  ;;  %v514_v56 = vadd.f32 %v931_v54, %v1050_v18  ;;  %v442_v57 = vadd.f32 %v1050_v18, %v441_v55  ;;  %v505_v58 = vpop.f32.mrb[13].mxu1  ;;  %v916_v59 = vpop.f32.mrb[14].mxu0 }
 0x100   : > { %706 = vst.msk [vmem:[%s1062_s27 + $0x64] sm:$0xf] %vm680_vm1, %v872_v52  ;;  %v534_v60 = vmax.f32 %v450_v53, 0.0  ;;  %v506_v61 = vadd.f32 %v1050_v18, %v505_v58  ;;  %v453_v62 = vadd.f32 %v916_v59, %v1050_v18  ;;  %v932_v63 = vpop.f32.mrb[14].mxu1  ;;  %v444_v0 = vpop.f32.mrb[15].mxu0 }
 0x101   : > { %v550_v1 = vmax.f32 %v514_v56, 0.0  ;;  %v532_v2 = vmax.f32 %v442_v57, 0.0  ;;  %v517_v3 = vadd.f32 %v932_v63, %v1050_v18  ;;  %v445_v4 = vadd.f32 %v1050_v18, %v444_v0  ;;  %v508_v5 = vpop.f32.mrb[15].mxu1 }
 0x102   : > { %v861_v6 = vpack.c.bf16 %v534_v60, %v534_v60  ;;  %v548_v7 = vmax.f32 %v506_v61, 0.0  ;;  %v535_v8 = vmax.f32 %v453_v62, 0.0  ;;  %v509_v9 = vadd.f32 %v1050_v18, %v508_v5 }
 0x103   : > { %v877_v10 = vpack.c.bf16 %v550_v1, %v550_v1  ;;  %v859_v11 = vpack.c.bf16 %v532_v2, %v532_v2  ;;  %v551_v12 = vmax.f32 %v517_v3, 0.0  ;;  %v533_v13 = vmax.f32 %v445_v4, 0.0 }
 0x104   : > { %695 = vst.msk [vmem:[%s1062_s27 + $0x38] sm:$0xf] %vm680_vm1, %v861_v6  ;;  %v875_v14 = vpack.c.bf16 %v548_v7, %v548_v7  ;;  %v862_v15 = vpack.c.bf16 %v535_v8, %v535_v8  ;;  %v549_v16 = vmax.f32 %v509_v9, 0.0 }
 0x105   : > { %711 = vst.msk [vmem:[%s1062_s27 + $0x78] sm:$0xf] %vm680_vm1, %v877_v10  ;;  %693 = vst.msk [vmem:[%s1062_s27 + $0x30] sm:$0xf] %vm680_vm1, %v859_v11  ;;  %v878_v17 = vpack.c.bf16 %v551_v12, %v551_v12  ;;  %v860_v19 = vpack.c.bf16 %v533_v13, %v533_v13 }
 0x106   : > { %709 = vst.msk [vmem:[%s1062_s27 + $0x70] sm:$0xf] %vm680_vm1, %v875_v14  ;;  %696 = vst.msk [vmem:[%s1062_s27 + $0x3c] sm:$0xf] %vm680_vm1, %v862_v15  ;;  %v876_v18 = vpack.c.bf16 %v549_v16, %v549_v16 }
 0x107   : > { %712 = vst.msk [vmem:[%s1062_s27 + $0x7c] sm:$0xf] %vm680_vm1, %v878_v17  ;;  %694 = vst.msk [vmem:[%s1062_s27 + $0x34] sm:$0xf] %vm680_vm1, %v860_v19 }
 0x108   : > { %710 = vst.msk [vmem:[%s1062_s27 + $0x74] sm:$0xf] %vm680_vm1, %v876_v18 }
 0x109 PF: > { %s13_s12 = sadd.s32 1, %s969_s12  }
 0x10a   : > { %p10_p4 = scmp.ge.s32.totalorder %s13_s12, 6  }
 0x10c   :  { %12 = sbr.rel (!%p10_p4) target bundleno = 1 (0x1), region = 62 }

</bundles_post_ra>
